<compile_context>
chip_gen: v6e
topology: v6e:2x2x1
jax: 0.10.0
libtpu: 0.0.40
codegen_flags: <defaults>
</compile_context>

<pallas_src>
import jax
import jax.numpy as jnp
from jax import lax
from jax.experimental import pallas as pl
from jax.experimental.pallas import tpu as pltpu

# ---------------- model dims ---------------------------------------------------
Z_DIM = 256
WRENCH_DIM = 6
CHANNELS = [Z_DIM, 128, 64, 32, 24, WRENCH_DIM]
LANES = 128
OUT_PAD = 8          # 6 real output channels, padded to one sublane group


def _round_up(n, m):
    return (n + m - 1) // m * m


# ---------------- the one Pallas kernel ----------------------------------------
def _fused_kernel(x_ref, wt_ref, b_ref, y_ref):
    # x_ref : (256, tile_L) f32   (native channel-major input tile)
    # wt_ref: (8, 256)      f32   (W_fused^T, rows 6..7 zero)
    # b_ref : (8, 128)      f32   (b_fused broadcast over lanes, rows 6..7 zero)
    # y_ref : (8, tile_L)   f32
    x = x_ref[...]
    wt = wt_ref[...]
    b = b_ref[:, 0:1]                                     # (8, 1)
    h = jnp.dot(wt, x,
                preferred_element_type=jnp.float32,
                precision=lax.Precision.HIGHEST) + b
    y_ref[...] = jnp.tanh(h)


# ---------------- wrapper -------------------------------------------------------
def wrench_decoder_causal(wrench_feature, packed, *, max_tile_l=2048):
    """wrench_feature: (B, 256, L) float32.
    packed: (wt_pad (8,256), b_pad (8,128), pattern_cm (6,32)) from pack_params.
    Returns (B, 6, 32*L - 31) float32 — same as the torch module's forward."""
    wt_pad, b_pad, pattern_cm = packed
    B, C, L = wrench_feature.shape
    assert C == Z_DIM, C

    # ---- choose an L tile (multiple of 128, or the full L for small inputs) ----
    if L <= max_tile_l:
        tile_l, l_pad = L, L
        # keep >= 2 grid steps when possible so v7x megacore can split the work
        if B == 1 and L >= 2 * LANES:
            tile_l = _round_up(-(-L // 2), LANES)
            l_pad = 2 * tile_l
    else:
        tile_l = (max_tile_l // LANES) * LANES
        l_pad = _round_up(L, tile_l)

    x = wrench_feature
    if l_pad != L:
        x = jnp.pad(x, ((0, 0), (0, 0), (0, l_pad - L)))

    # ---- fused 5-layer linear + tanh over the stride-32 "data" positions -------
    y_pad = pl.pallas_call(
        _fused_kernel,
        out_shape=jax.ShapeDtypeStruct((B, OUT_PAD, l_pad), jnp.float32),
        grid=(B, l_pad // tile_l),
        in_specs=[
            pl.BlockSpec((None, Z_DIM, tile_l), lambda b, l: (b, 0, l)),
            pl.BlockSpec((OUT_PAD, Z_DIM), lambda b, l: (0, 0)),   # VMEM-resident
            pl.BlockSpec((OUT_PAD, LANES), lambda b, l: (0, 0)),   # VMEM-resident
        ],
        out_specs=pl.BlockSpec((None, OUT_PAD, tile_l), lambda b, l: (b, 0, l)),
        compiler_params=pltpu.CompilerParams(
            dimension_semantics=("parallel", "parallel")),
    )(x, wt_pad, b_pad)

    # ---- channel-major assembly (layout only, no transposes) -------------------
    y = y_pad[:, :WRENCH_DIM, :L]                                   # (B, 6, L)
    blocks = jnp.broadcast_to(pattern_cm[None, :, None, :],
                              (B, WRENCH_DIM, L, 32))
    blocks = blocks.at[:, :, :, 0].set(y)
    out = blocks.reshape(B, WRENCH_DIM, 32 * L)[:, :, : 32 * L - 31]
    return out


# ---------------- params: init, packing, pure-JAX reference ---------------------
def init_params(key, channels=CHANNELS):
    params = []
    for i in range(len(channels) - 1):
        key, wk, bk = jax.random.split(key, 3)
        fan_in, fan_out = channels[i], channels[i + 1]
        w = jnp.sqrt(1.0 / fan_in) * jax.random.normal(
            wk, (fan_in, fan_out), dtype=jnp.float32)
        b = 0.01 * jax.random.normal(bk, (fan_out,), dtype=jnp.float32)
        params.append((w, b))
    return params


def pack_params(params):
    """Pre-compose the purely-linear 5-layer chain host-side.

    Returns (wt_pad (8,256), b_pad (8,128), pattern_cm (6,32))."""
    hi = lax.Precision.HIGHEST
    ws = [w for (w, _) in params]
    bs = [b for (_, b) in params]

    # fused weight: W1@W2@W3@W4@W5  -> (256, 6)
    w_fused = ws[0]
    for w in ws[1:]:
        w_fused = jnp.dot(w_fused, w, precision=hi)

    # push bias of layer k (1-indexed) through layers k+1..5 (row-vector conv.)
    def push(b, k):
        h = b
        for j in range(k, 5):
            h = jnp.dot(h, ws[j], precision=hi) + bs[j]
        return h

    b_fused = push(bs[0], 1)                                # (6,) data-path bias

    # constant (bias-only) outputs for positions p % 32 != 0, with final tanh
    c_odd = jnp.tanh(push(bs[4], 5))                        # p % 2  == 1
    c2 = jnp.tanh(push(bs[3], 4))                           # p % 4  == 2
    c4 = jnp.tanh(push(bs[2], 3))                           # p % 8  == 4
    c8 = jnp.tanh(push(bs[1], 2))                           # p % 16 == 8
    c16 = jnp.tanh(push(bs[0], 1))                          # p % 32 == 16

    j = jnp.arange(32)
    pat = jnp.zeros((32, WRENCH_DIM), jnp.float32)
    pat = jnp.where((j % 2 == 1)[:, None], c_odd[None, :], pat)
    pat = jnp.where((j % 4 == 2)[:, None], c2[None, :], pat)
    pat = jnp.where((j % 8 == 4)[:, None], c4[None, :], pat)
    pat = jnp.where((j % 16 == 8)[:, None], c8[None, :], pat)
    pat = jnp.where((j == 16)[:, None], c16[None, :], pat)
    pattern_cm = pat.T                                      # (6, 32); col 0 unused

    wt_pad = jnp.zeros((OUT_PAD, Z_DIM), jnp.float32).at[:WRENCH_DIM, :].set(
        w_fused.T)
    b_pad = jnp.zeros((OUT_PAD, LANES), jnp.float32).at[:WRENCH_DIM, :].set(
        jnp.broadcast_to(b_fused[:, None], (WRENCH_DIM, LANES)))
    return wt_pad, b_pad, pattern_cm


def _reference(x, params):
    """Plain JAX reference: 5 x ConvTranspose1d(k=1, s=2), then tanh."""
    h = x
    for (w, b) in params:
        Bb, _, Ll = h.shape
        cout = w.shape[1]
        y = jnp.einsum("bcl,cd->bdl", h, w,
                       precision=lax.Precision.HIGHEST) + b[None, :, None]
        out = jnp.broadcast_to(b[None, :, None], (Bb, cout, 2 * Ll - 1))
        out = out.at[:, :, ::2].set(y)
        h = out
    return jnp.tanh(h)


# ---------------- demo -----------------------------------------------------------
if __name__ == "__main__":
    key = jax.random.PRNGKey(0)
    k_x, k_p = jax.random.split(key)

    B, L = 2, 8
    wrench_feature = jax.random.normal(k_x, (B, Z_DIM, L), dtype=jnp.float32)
    params = init_params(k_p)
    packed = pack_params(params)

    out = wrench_decoder_causal(wrench_feature, packed)
    out = jax.block_until_ready(out)

    ref = _reference(wrench_feature, params)
    assert out.shape == (B, WRENCH_DIM, 32 * L - 31), out.shape
    assert jnp.allclose(out, ref, atol=5e-3, rtol=5e-3), float(
        jnp.max(jnp.abs(out - ref)))

    print("KERNEL_OK")
</pallas_src>

<mosaic_0001>
module attributes {stable_mosaic.version = 11 : i64} {
  func.func @_fused_kernel(%arg0: i32, %arg1: i32, %arg2: memref<1x256x8xf32, #tpu.memory_space<vmem>>, %arg3: memref<8x256xf32, #tpu.memory_space<vmem>>, %arg4: memref<8x128xf32, #tpu.memory_space<vmem>>, %arg5: memref<1x8x8xf32, #tpu.memory_space<vmem>>) attributes {dimension_semantics = [#tpu.dimension_semantics<parallel>, #tpu.dimension_semantics<parallel>], iteration_bounds = array<i64: 2, 1>, scalar_prefetch = 0 : i64, scratch_operands = 0 : i64, tpu.core_type = #tpu.core_type<tc>, window_params = [{transform_indices = @transform_0, window_bounds = array<i64: 1, 256, 8>}, {pipeline_mode = #tpu.pipeline_mode<synchronous>, transform_indices = @transform_1, window_bounds = array<i64: 8, 256>}, {pipeline_mode = #tpu.pipeline_mode<synchronous>, transform_indices = @transform_2, window_bounds = array<i64: 8, 128>}, {transform_indices = @transform_3, window_bounds = array<i64: 1, 8, 8>}]} {
    %c0 = arith.constant 0 : index
    %c0_0 = arith.constant 0 : index
    %c0_1 = arith.constant 0 : index
    %0 = vector.load %arg2[%c0, %c0_0, %c0_1] : memref<1x256x8xf32, #tpu.memory_space<vmem>>, vector<1x256x8xf32>
    %1 = vector.shape_cast %0 : vector<1x256x8xf32> to vector<256x8xf32>
    %c0_2 = arith.constant 0 : index
    %c0_3 = arith.constant 0 : index
    %2 = vector.load %arg3[%c0_2, %c0_3] : memref<8x256xf32, #tpu.memory_space<vmem>>, vector<8x256xf32>
    %c0_4 = arith.constant 0 : index
    %c0_5 = arith.constant 0 : index
    %3 = vector.load %arg4[%c0_4, %c0_5] : memref<8x128xf32, #tpu.memory_space<vmem>>, vector<8x1xf32>
    %cst = arith.constant dense<0.000000e+00> : vector<8x8xf32>
    %4 = tpu.matmul %2, %1, %cst {dimension_numbers = #tpu.dot_dimension_numbers<[1], [0], [0], [1], [0, 0, 1, 1], [], []>, precision = #tpu.contract_precision<fp32>} : vector<8x256xf32>, vector<256x8xf32>, vector<8x8xf32> -> vector<8x8xf32>
    %5 = vector.broadcast %3 : vector<8x1xf32> to vector<8x8xf32>
    %6 = arith.addf %4, %5 : vector<8x8xf32>
    %7 = math.tanh %6 : vector<8x8xf32>
    %c0_6 = arith.constant 0 : index
    %c0_7 = arith.constant 0 : index
    %c0_8 = arith.constant 0 : index
    %8 = vector.load %arg5[%c0_6, %c0_7, %c0_8] : memref<1x8x8xf32, #tpu.memory_space<vmem>>, vector<1x8x8xf32>
    %9 = vector.shape_cast %8 : vector<1x8x8xf32> to vector<8x8xf32>
    %10 = vector.shape_cast %7 : vector<8x8xf32> to vector<1x8x8xf32>
    tpu.vector_store %arg5[%c0_6, %c0_7, %c0_8], %10 {strides = array<i32>} : memref<1x8x8xf32, #tpu.memory_space<vmem>>, vector<1x8x8xf32>,
    return
  }
  func.func @transform_0(%arg0: i32, %arg1: i32) -> (i32, i32, i32) {
    %c0_i32 = arith.constant 0 : i32
    %c0_i32_0 = arith.constant 0 : i32
    return %arg0, %c0_i32, %arg1 : i32, i32, i32
  }
  func.func @transform_1(%arg0: i32, %arg1: i32) -> (i32, i32) {
    %c0_i32 = arith.constant 0 : i32
    %c0_i32_0 = arith.constant 0 : i32
    %c0_i32_1 = arith.constant 0 : i32
    return %c0_i32, %c0_i32_0 : i32, i32
  }
  func.func @transform_2(%arg0: i32, %arg1: i32) -> (i32, i32) {
    %c0_i32 = arith.constant 0 : i32
    %c0_i32_0 = arith.constant 0 : i32
    %c0_i32_1 = arith.constant 0 : i32
    return %c0_i32, %c0_i32_0 : i32, i32
  }
  func.func @transform_3(%arg0: i32, %arg1: i32) -> (i32, i32, i32) {
    %c0_i32 = arith.constant 0 : i32
    %c0_i32_0 = arith.constant 0 : i32
    return %arg0, %c0_i32, %arg1 : i32, i32, i32
  }
}

</mosaic_0001>

<bundles_post_ra>
// kernel: tpu_custom_call.1
= control target key start
LH: loop header
LB: loop body
LE: loop exit
PB: predicated region body
PF: predicated region fallthrough
CT: control target
= control target key end

     0   :  { %8 = vsyncpa [#allocation3], 0  ;;  %s2330_s0 = inlined_call_operand.vmem [shape: f32[2,256,8], index: 0, kind: input, shape index: {}]   ;;  %s2331_s1 = inlined_call_operand.vmem [shape: f32[8,256], index: 1, kind: input, shape index: {}]   ;;  %s2332_s2 = inlined_call_operand.vmem [shape: f32[8,128], index: 2, kind: input, shape index: {}]   ;;  %s2333_s3 = inlined_call_operand.hbm [shape: f32[2,8,8], index: 3, kind: output, shape index: {}]  }
   0x1   :  { %10 = vsyncpa [#allocation3 + $0x1], 0  ;;  %s1570_s12 = smov 0   ;;  %s1572_s13 = smov 0  }
   0x2   :  { %s1574_s14 = smov 0   ;;  %s1576_s15 = smov 0  }
   0x3   :  { %s1578_s16 = smov 0   ;;  %s1580_s17 = smov 0  }
   0x4 LB: > { %s1188_s18 = sadd.s32 4294967295, %s1546_s17   ;;  %s1189_s19 = sadd.s32 4294967294, %s1546_s17   ;;  %s1546_s17 = sphi %s1580_s17, %s16_s17   ;;  %s1542_s16 = sphi %s1578_s16, %s2502_s16   ;;  %s1538_s15 = sphi %s1576_s15, %s2501_s15   ;;  %s1534_s14 = sphi %s1574_s14, %s2500_s14   ;;  %s1530_s13 = sphi %s1572_s13, %s2499_s13   ;;  %s1526_s12 = sphi %s1570_s12, %s2498_s12  }
   0x5   : > { %s28_s20 = sadd.s32 1, %s1542_s16  ;;  %s107_s21 = sadd.s32 1, %s1534_s14 }
   0x6   : > { %p30_p0 = scmp.ge.s32.totalorder %s28_s20, 2  ;;  %p117_p1 = scmp.ne.s32.totalorder %s1534_s14, %s1530_s13 }
   0x7   : > { %p118_p2 = scmp.eq.s32.totalorder %s1188_s18, 1  ;;  %p123_p3 = scmp.ne.s32.totalorder %s1530_s13, %s1526_s12 }
   0x8   : > { %s2504_s20 = smov (%p30_p0, %s28_s20), 0  ;;  %p124_p5 = scmp.eq.s32.totalorder %s1189_s19, 1 }
   0x9   : > { %p1610_p4 = por %p118_p2, %p117_p1  ;;  %s102_s23 = ssub.s32 %s1542_s16, %s2504_s20 }
   0xa   : > { %p1192_p6 = scmp.ge.s32.totalorder %s1546_s17, 1  ;;  %p105_p7 = scmp.eq.s32.totalorder %s102_s23, 0 }
   0xb   : > { %p1617_p8 = por %p124_p5, %p123_p3  ;;  %p159_p9 = scmp.lt.s32.totalorder %s1546_s17, 3 }
   0xc   : > { %s1623_s25 = scalar_select %p105_p7, %s1534_s14, %s107_s21  }
   0xd   : > { %p160_p10 = pnand %p1192_p6, %p159_p9 }
   0xf   : > { %163 = sbr.rel (%p160_p10) target bundleno = 366 (0x16e), region = 32 }
  0x14   : > { %p186_p11 = scmp.lt.s32.totalorder %s1538_s15, 1  ;;  %v227_v0 = vld [vmem:[%s2331_s1 + $0x8] sm:$0xff]  ;;  %v226_v1 = vld [vmem:[%s2331_s1] sm:$0xff]  ;;  %v1548_v5 = vmov 0   ;;  %s183_s10 = sand.u32 1, %s1530_s13   ;;  %vm1097_vm0 = vcmask 64512  }
  0x15   : > { %v228_v2 = vld [vmem:[%s2332_s2] sm:$0xff]  ;;  %v1635_v3 = vand.u32 4294901760, %v227_v0  ;;  %v1637_v4 = vand.u32 4294901760, %v226_v1  ;;  %1467 = vset.pattern.permute.xlu0 %v1548_v5  ;;  %s1193_s11 = sshll.u32 %s183_s10, 3  ;;  %s1197_s18 = sshll.u32 %s1538_s15, 7 }
  0x16   : > { %s187_s5 = scalar_select %p186_p11, %s1538_s15, 1  ;;  %231 = vperm.xlu0 %1467, %v228_v2  }
  0x17   : > { %2406 = vst [vmem:[#allocation5_spill] sm:$0xff] %v1635_v3  ;;  %2407 = vst [vmem:[#allocation6_spill] sm:$0xff] %v1637_v4  ;;  %v1641_v6 = vsub.f32 %v227_v0, %v1635_v3  ;;  %v1644_v7 = vsub.f32 %v226_v1, %v1637_v4  ;;  %571 = vmatprep.mubr.f32.mxu1 %v1635_v3  ;;  %s185_s19 = scalar_lea.vmem [#allocation2], %s1193_s11  ;;  %s2290_s27 = scalar_lea.hbm %s2333_s3, %s1197_s18 }
  0x18   : > { %s1200_s6 = sshll.u32 %s187_s5, 8  ;;  %s1114_s21 = sshll.u32 %s185_s19, 4  ;;  %s1115_s21 = int_to_ptr.vmem [resolvable:$true] %s1114_s21 }
  0x19   : > { %2408 = vst [vmem:[#allocation7_spill] sm:$0xff] %v1644_v7  ;;  %s1650_s9 = scalar_lea.vmem %s2330_s0, %s1200_s6  ;;  %v2335_v8 = vand.u32 4294901760, %v1641_v6  ;;  %v2334_v9 = vand.u32 4294901760, %v1644_v7  ;;  %s1100_s28 = scalar_lea.sflag [#allocation3], %s183_s10 }
  0x1a   : > { %v225_v10 = vld [vmem:[%s1650_s9 + $0xf8] sm:$0xff]  ;;  %v224_v12 = vld [vmem:[%s1650_s9 + $0xf0] sm:$0xff]  ;;  %v223_v17 = vld [vmem:[%s1650_s9 + $0xe8] sm:$0xff]  ;;  %s1470_s29 = scalar_lea.vmem %s1115_s21, 128  ;;  %s1549_s30 = smov [#allocation2]  }
  0x1b   : > { %v209_v11 = vld [vmem:[%s1650_s9 + $0x78] sm:$0xff]  ;;  %v1657_v13 = vand.u32 4294901760, %v225_v10  ;;  %v1661_v15 = vand.u32 4294901760, %v224_v12  ;;  %v208_v16 = vld [vmem:[%s1650_s9 + $0x70] sm:$0xff]  ;;  %v207_v18 = vld [vmem:[%s1650_s9 + $0x68] sm:$0xff]  ;;  %v1669_v19 = vsub.f32 %v1641_v6, %v2335_v8  ;;  %v1673_v21 = vand.u32 4294901760, %v223_v17  ;;  %p1471_p12 = scmp.ne.s32.totalorder %s1115_s21, %s1470_s29 }
  0x1c   : > { %v1659_v14 = vand.u32 4294901760, %v209_v11  ;;  %v1671_v20 = vand.u32 4294901760, %v208_v16  ;;  %v1675_v22 = vand.u32 4294901760, %v207_v18  ;;  %v222_v23 = vld [vmem:[%s1650_s9 + $0xe0] sm:$0xff]  ;;  %v1680_v25 = vld [vmem:[%s1650_s9 + $0xd8] sm:$0xff]  ;;  %v1685_v26 = vsub.f32 %v1644_v7, %v2334_v9  ;;  %v1702_v32 = vld [vmem:[%s1650_s9 + $0xd0] sm:$0xff] }
  0x1d   : > { %v206_v24 = vld [vmem:[%s1650_s9 + $0x60] sm:$0xff]  ;;  %1201 = vmatprep.subr.mxu0 %v1657_v13  ;;  %v1688_v27 = vand.u32 4294901760, %v222_v23  ;;  %v1693_v29 = vand.u32 4294901760, %v1680_v25  ;;  %v1696_v30 = vsub.f32 %v225_v10, %v1657_v13  ;;  %v1699_v31 = vld [vmem:[%s1650_s9 + $0x58] sm:$0xff]  ;;  %v1705_v33 = vld [vmem:[%s1650_s9 + $0x50] sm:$0xff]  ;;  %v1715_v36 = vand.u32 4294901760, %v1702_v32  ;;  %p1472_p13 = pnand %p1471_p12, %p1610_p4 }
  0x1e   : > { %v1690_v28 = vand.u32 4294901760, %v206_v24  ;;  %1202 = vmatpush3.msra.mxu0 %v1659_v14  ;;  %v1709_v34 = vand.u32 4294901760, %v1699_v31  ;;  %v1712_v35 = vsub.f32 %v209_v11, %v1659_v14  ;;  %v1718_v37 = vsub.f32 %v224_v12, %v1661_v15  ;;  %v1721_v38 = vld [vmem:[%s1650_s9 + $0xc8] sm:$0xff]  ;;  %v1727_v40 = vld [vmem:[%s1650_s9 + $0xc0] sm:$0xff]  ;;  %v1775_v58 = vld [vmem:[%s1650_s9 + $0xb8] sm:$0xff]  ;;  %s1474_s4 = sshll.u32 %s1549_s30, 4  ;;  %s1475_s4 = int_to_ptr.vmem [resolvable:$false] %s1474_s4 }
  0x1f   : > { %2409 = vst [vmem:[#allocation8_spill] sm:$0xff] %v1693_v29  ;;  %2411 = vst [vmem:[#allocation10_spill] sm:$0xff] %v1715_v36  ;;  %v1724_v39 = vld [vmem:[%s1650_s9 + $0x48] sm:$0xff]  ;;  %1203 = vmatprep.subr.mxu0 %v1661_v15  ;;  %v2345_v41 = vand.u32 4294901760, %v1696_v30  ;;  %v1732_v42 = vand.u32 4294901760, %v1705_v33  ;;  %v1735_v43 = vsub.f32 %v208_v16, %v1671_v20  ;;  %v1738_v44 = vand.u32 4294901760, %v1721_v38  ;;  %p1473_p0 = pneg %p1472_p13  ;;  %p1477_p1 = scmp.lt.s32.totalorder %s1115_s21, %s1475_s4 }
  0x20   : > { %2410 = vst [vmem:[#allocation9_spill] sm:$0xff] %v1709_v34  ;;  %1204 = vmatpush3.msra.mxu0 %v1671_v20  ;;  %v2344_v45 = vand.u32 4294901760, %v1712_v35  ;;  %v2342_v46 = vand.u32 4294901760, %v1718_v37  ;;  %v1744_v47 = vsub.f32 %v223_v17, %v1673_v21  ;;  %v1747_v48 = vand.u32 4294901760, %v1724_v39  ;;  %v1750_v49 = vld [vmem:[%s1650_s9 + $0x40] sm:$0xff]  ;;  %v1786_v63 = vld [vmem:[%s1650_s9 + $0x38] sm:$0xff] }
  0x21   : > { %2412 = vst [vmem:[#allocation11_spill] sm:$0xff] %v1732_v42  ;;  %2413 = vst [vmem:[#allocation12_spill] sm:$0xff] %v1738_v44  ;;  %1205 = vmatprep.subr.mxu0 %v1673_v21  ;;  %v462_v50 = vsub.f32 %v1696_v30, %v2345_v41  ;;  %v2341_v51 = vand.u32 4294901760, %v1735_v43  ;;  %v1758_v52 = vsub.f32 %v207_v18, %v1675_v22  ;;  %v1761_v53 = vand.u32 4294901760, %v1727_v40  ;;  %v1794_v10 = vld [vmem:[%s1650_s9 + $0xb0] sm:$0xff]  ;;  %s1476_s15 = scalar_lea.vmem %s1475_s4, 256 }
  0x22   : > { %2414 = vst [vmem:[#allocation13_spill] sm:$0xff] %v1747_v48  ;;  %1206 = vmatpush3.msra.mxu0 %v1675_v22  ;;  %v350_v54 = vsub.f32 %v1712_v35, %v2344_v45  ;;  %v469_v55 = vsub.f32 %v1718_v37, %v2342_v46  ;;  %v2339_v56 = vand.u32 4294901760, %v1744_v47  ;;  %v1772_v57 = vsub.f32 %v222_v23, %v1688_v27  ;;  %v1807_v18 = vld [vmem:[%s1650_s9 + $0x30] sm:$0xff]  ;;  %v1892_v45 = vld [vmem:[%s1650_s9 + $0x98] sm:$0xff]  ;;  %p1478_p2 = scmp.lt.s32.totalorder %s1476_s15, %s1470_s29 }
  0x23   : > { %2415 = vst [vmem:[#allocation14_spill] sm:$0xff] %v1761_v53  ;;  %1207 = vmatprep.subr.mxu0 %v1688_v27  ;;  %v463_v59 = vand.u32 4294901760, %v462_v50  ;;  %v357_v60 = vsub.f32 %v1735_v43, %v2341_v51  ;;  %v2338_v61 = vand.u32 4294901760, %v1758_v52  ;;  %v1783_v62 = vand.u32 4294901760, %v1750_v49 }
  0x24   : > { %1208 = vmatpush3.msra.mxu0 %v1690_v28  ;;  %v351_v0 = vand.u32 4294901760, %v350_v54  ;;  %v470_v1 = vand.u32 4294901760, %v469_v55  ;;  %v476_v2 = vsub.f32 %v1744_v47, %v2339_v56  ;;  %v2336_v5 = vand.u32 4294901760, %v1772_v57  ;;  %v1821_v55 = vld [vmem:[%s1650_s9 + $0xa8] sm:$0xff]  ;;  %p1479_p3 = por %p1478_p2, %p1477_p1 }
  0x25   : > { %2416 = vst [vmem:[#allocation15_spill] sm:$0xff] %v1783_v62  ;;  %1209 = vmatprep.subr.mxu0 %v1693_v29  ;;  %1236 = vmatprep.subr.mxu1 %v463_v59  ;;  %v358_v11 = vand.u32 4294901760, %v357_v60  ;;  %v364_v12 = vsub.f32 %v1758_v52, %v2338_v61  ;;  %v1801_v16 = vsub.f32 %v206_v24, %v1690_v28  ;;  %v1804_v17 = vand.u32 4294901760, %v1775_v58 }
  0x26   : > { %1210 = vmatpush3.msra.mxu0 %v1709_v34  ;;  %1237 = vmatpush3.msra.mxu1 %v351_v0  ;;  %v477_v23 = vand.u32 4294901760, %v476_v2  ;;  %v483_v50 = vsub.f32 %v1772_v57, %v2336_v5  ;;  %v1815_v54 = vsub.f32 %v1680_v25, %v1693_v29  ;;  %v1818_v24 = vand.u32 4294901760, %v1786_v63  ;;  %v1833_v25 = vld [vmem:[%s1650_s9 + $0x28] sm:$0xff]  ;;  %p1480_p5 = pnand %p1479_p3, %p1473_p0 }
  0x27   : > { %2417 = vst [vmem:[#allocation16_spill] sm:$0xff] %v1804_v17  ;;  %1211 = vmatprep.subr.mxu0 %v1715_v36  ;;  %1238 = vmatprep.subr.mxu1 %v470_v1  ;;  %v365_v59 = vand.u32 4294901760, %v364_v12  ;;  %v2337_v60 = vand.u32 4294901760, %v1801_v16  ;;  %v1827_v0 = vsub.f32 %v1699_v31, %v1709_v34  ;;  %v1830_v2 = vand.u32 4294901760, %v1794_v10 }
  0x28   : > { %2418 = vst [vmem:[#allocation17_spill] sm:$0xff] %v1818_v24  ;;  %1212 = vmatpush3.msra.mxu0 %v1732_v42  ;;  %1239 = vmatpush3.msra.mxu1 %v358_v11  ;;  %v484_v9 = vand.u32 4294901760, %v483_v50  ;;  %v2340_v8 = vand.u32 4294901760, %v1815_v54  ;;  %v1839_v1 = vsub.f32 %v1702_v32, %v1715_v36  ;;  %v1842_v12 = vand.u32 4294901760, %v1807_v18  ;;  %v1857_v50 = vld [vmem:[%s1650_s9 + $0xa0] sm:$0xff] }
  0x29   : > { %2419 = vst [vmem:[#allocation18_spill] sm:$0xff] %v1830_v2  ;;  %1213 = vmatprep.subr.mxu0 %v1738_v44  ;;  %1240 = vmatprep.subr.mxu1 %v477_v23  ;;  %v371_v31 = vsub.f32 %v1801_v16, %v2337_v60  ;;  %v2343_v5 = vand.u32 4294901760, %v1827_v0  ;;  %v1851_v11 = vsub.f32 %v1705_v33, %v1732_v42  ;;  %v1854_v32 = vand.u32 4294901760, %v1821_v55 }
  0x2a   : > { %2420 = vst [vmem:[#allocation19_spill] sm:$0xff] %v1842_v12  ;;  %1214 = vmatpush3.msra.mxu0 %v1747_v48  ;;  %1241 = vmatpush3.msra.mxu1 %v365_v59  ;;  %v490_v23 = vsub.f32 %v1815_v54, %v2340_v8  ;;  %v2346_v60 = vand.u32 4294901760, %v1839_v1  ;;  %v1866_v61 = vsub.f32 %v1721_v38, %v1738_v44  ;;  %v1869_v33 = vand.u32 4294901760, %v1833_v25  ;;  %v1881_v38 = vld [vmem:[%s1650_s9 + $0x20] sm:$0xff] }
  0x2b   : > { %2421 = vst [vmem:[#allocation20_spill] sm:$0xff] %v1854_v32  ;;  %1215 = vmatprep.subr.mxu0 %v1761_v53  ;;  %1242 = vmatprep.subr.mxu1 %v484_v9  ;;  %v372_v56 = vand.u32 4294901760, %v371_v31  ;;  %v378_v59 = vsub.f32 %v1827_v0, %v2343_v5  ;;  %v2351_v8 = vand.u32 4294901760, %v1851_v11  ;;  %v1878_v51 = vsub.f32 %v1724_v39, %v1747_v48  ;;  %v1904_v31 = vld [vmem:[%s1650_s9 + $0x18] sm:$0xff]  ;;  %v1929_v48 = vld [vmem:[%s1650_s9 + $0x10] sm:$0xff] }
  0x2c   : > { %2422 = vst [vmem:[#allocation21_spill] sm:$0xff] %v1869_v33  ;;  %1216 = vmatpush3.msra.mxu0 %v1783_v62  ;;  %v491_v46 = vand.u32 4294901760, %v490_v23  ;;  %v497_v9 = vsub.f32 %v1839_v1, %v2346_v60  ;;  %v1889_v5 = vand.u32 4294901760, %v1857_v50  ;;  %v1901_v60 = vsub.f32 %v1727_v40, %v1761_v53  ;;  %v1918_v40 = vld [vmem:[%s1650_s9 + $0x90] sm:$0xff] }
  0x2d   : > { %1243 = vmatpush3.msra.mxu1 %v372_v56  ;;  %1217 = vmatprep.subr.mxu0 %v1804_v17  ;;  %v379_v39 = vand.u32 4294901760, %v378_v59  ;;  %v385_v23 = vsub.f32 %v1851_v11, %v2351_v8  ;;  %v2356_v41 = vand.u32 4294901760, %v1878_v51  ;;  %v2424_v3 = vand.u32 4294901760, %v1866_v61 }
  0x2e   : > { %2423 = vst [vmem:[#allocation22_spill] sm:$0xff] %v1889_v5  ;;  %1244 = vmatprep.subr.mxu1 %v491_v46  ;;  %1218 = vmatpush3.msra.mxu0 %v1818_v24  ;;  %v498_v56 = vand.u32 4294901760, %v497_v9  ;;  %v1911_v7 = vand.u32 4294901760, %v1881_v38  ;;  %v1915_v8 = vsub.f32 %v1750_v49, %v1783_v62  ;;  %v1926_v53 = vand.u32 4294901760, %v1892_v45 }
  0x2f   : > { %v504_v59 = vsub.f32 %v1866_v61, %v2424_v3  ;;  %1245 = vmatpush3.msra.mxu1 %v379_v39  ;;  %1219 = vmatprep.subr.mxu0 %v1830_v2  ;;  %v386_v46 = vand.u32 4294901760, %v385_v23  ;;  %v392_v9 = vsub.f32 %v1878_v51, %v2356_v41  ;;  %v1935_v23 = vsub.f32 %v1775_v58, %v1804_v17  ;;  %v1941_v3 = vld [vmem:[%s1650_s9 + $0x88] sm:$0xff] }
  0x30   : > { %1246 = vmatprep.subr.mxu1 %v498_v56  ;;  %1220 = vmatpush3.msra.mxu0 %v1842_v12  ;;  %v1938_v41 = vand.u32 4294901760, %v1904_v31  ;;  %v2425_v56 = vand.u32 4294901760, %v1901_v60  ;;  %v1949_v39 = vsub.f32 %v1786_v63, %v1818_v24  ;;  %v1952_v58 = vand.u32 4294901760, %v1918_v40  ;;  %v1967_v63 = vld [vmem:[%s1650_s9 + $0x8] sm:$0xff] }
  0x31   : > { %v505_v49 = vand.u32 4294901760, %v504_v59  ;;  %1247 = vmatpush3.msra.mxu1 %v386_v46  ;;  %1221 = vmatprep.subr.mxu0 %v1854_v32  ;;  %v393_v62 = vand.u32 4294901760, %v392_v9  ;;  %v2426_v46 = vand.u32 4294901760, %v1915_v8  ;;  %v1964_v44 = vand.u32 4294901760, %v1929_v48 }
  0x32   : > { %v511_v59 = vsub.f32 %v1901_v60, %v2425_v56  ;;  %1222 = vmatpush3.msra.mxu0 %v1869_v33  ;;  %v1961_v56 = vsub.f32 %v1794_v10, %v1830_v2  ;;  %v1976_v9 = vand.u32 4294901760, %v1941_v3  ;;  %v1979_v10 = vld [vmem:[%s1650_s9 + $0x80] sm:$0xff]  ;;  %v1988_v24 = vsub.f32 %v1821_v55, %v1854_v32 }
  0x33   : > { %1248 = vmatprep.subr.mxu1 %v505_v49  ;;  %v399_v17 = vsub.f32 %v1915_v8, %v2426_v46  ;;  %1223 = vmatprep.subr.mxu0 %v1889_v5  ;;  %v1973_v46 = vsub.f32 %v1807_v18, %v1842_v12  ;;  %v2429_v18 = vand.u32 4294901760, %v1949_v39  ;;  %v2011_v36 = vand.u32 4294901760, %v1979_v10 }
  0x34   : > { %1249 = vmatpush3.msra.mxu1 %v393_v62  ;;  %v512_v49 = vand.u32 4294901760, %v511_v59  ;;  %1224 = vmatpush3.msra.mxu0 %v1911_v7  ;;  %v2427_v62 = vand.u32 4294901760, %v1935_v23  ;;  %2428 = vst [vmem:[#allocation23_spill] sm:$0xff] %v1988_v24  ;;  %v2003_v59 = vld [vmem:[%s1650_s9] sm:$0xff] }
  0x35   : > { %v400_v2 = vand.u32 4294901760, %v399_v17  ;;  %1225 = vmatprep.subr.mxu0 %v1926_v53  ;;  %v406_v12 = vsub.f32 %v1949_v39, %v2429_v18  ;;  %v1996_v17 = vand.u32 4294901760, %v1967_v63  ;;  %v2383_v18 = vand.u32 4294901760, %v1988_v24 }
  0x36   : > { %v518_v42 = vsub.f32 %v1935_v23, %v2427_v62  ;;  %1250 = vmatprep.subr.mxu1 %v512_v49  ;;  %v2000_v62 = vsub.f32 %v1833_v25, %v1869_v33  ;;  %1226 = vmatpush3.msra.mxu0 %v1938_v41  ;;  %v2430_v49 = vand.u32 4294901760, %v1961_v56  ;;  %v2431_v25 = vand.u32 4294901760, %v1973_v46 }
  0x37   : > { %1251 = vmatpush3.msra.mxu1 %v400_v2  ;;  %v407_v34 = vand.u32 4294901760, %v406_v12  ;;  %1227 = vmatprep.subr.mxu0 %v1952_v58  ;;  %v2020_v2 = vsub.f32 %v1857_v50, %v1889_v5  ;;  %v532_v12 = vsub.f32 %v1988_v24, %v2383_v18  ;;  %v2027_v29 = vand.u32 4294901760, %v2003_v59 }
  0x38   : > { %v519_v55 = vand.u32 4294901760, %v518_v42  ;;  %v525_v32 = vsub.f32 %v1961_v56, %v2430_v49  ;;  %v413_v33 = vsub.f32 %v1973_v46, %v2431_v25  ;;  %1228 = vmatpush3.msra.mxu0 %v1964_v44  ;;  %v2031_v25 = vsub.f32 %v1881_v38, %v1911_v7 }
  0x39   : > { %1229 = vmatprep.subr.mxu0 %v1976_v9  ;;  %v2432_v50 = vand.u32 4294901760, %v2000_v62  ;;  %v334_v5 = vand.u32 4294901760, %v1669_v19  ;;  %v533_v18 = vand.u32 4294901760, %v532_v12  ;;  %v2056_v12 = vsub.f32 %v1918_v40, %v1952_v58 }
  0x3a   : > { %1252 = vmatprep.subr.mxu1 %v519_v55  ;;  %v526_v49 = vand.u32 4294901760, %v525_v32  ;;  %v414_v42 = vand.u32 4294901760, %v413_v33  ;;  %v2390_v55 = vand.u32 4294901760, %v2020_v2  ;;  %1230 = vmatpush3.msra.mxu0 %v1996_v17  ;;  %v2386_v24 = vand.u32 4294901760, %v2031_v25 }
  0x3b   : > { %1253 = vmatpush3.msra.mxu1 %v407_v34  ;;  %v420_v32 = vsub.f32 %v2000_v62, %v2432_v50  ;;  %v2043_v34 = vsub.f32 %v1892_v45, %v1926_v53  ;;  %v340_v33 = vand.u32 4294901760, %v1685_v26  ;;  %1231 = vmatprep.subr.mxu0 %v2011_v36  ;;  %2433 = vst [vmem:[#allocation24_spill] sm:$0xff] %v2056_v12  ;;  %v2388_v50 = vand.u32 4294901760, %v2056_v12 }
  0x3c   : > { %1254 = vmatprep.subr.mxu1 %v526_v49  ;;  %v539_v19 = vsub.f32 %v2020_v2, %v2390_v55  ;;  %v2052_v49 = vsub.f32 %v1904_v31, %v1938_v41  ;;  %1232 = vmatpush3.msra.mxu0 %v2027_v29  ;;  %v427_v26 = vsub.f32 %v2031_v25, %v2386_v24 }
  0x3d   : > { %1255 = vmatpush3.msra.mxu1 %v414_v42  ;;  %v421_v38 = vand.u32 4294901760, %v420_v32  ;;  %v2389_v45 = vand.u32 4294901760, %v2043_v34  ;;  %v2065_v42 = vsub.f32 %v1929_v48, %v1964_v44  ;;  %v2069_v31 = vsub.f32 %v1941_v3, %v1976_v9  ;;  %335 = vmatprep.mubr.f32.mxu0 %v334_v5 }
  0x3e   : > { %1256 = vmatprep.subr.mxu1 %v533_v18  ;;  %v540_v40 = vand.u32 4294901760, %v539_v19  ;;  %v2387_v18 = vand.u32 4294901760, %v2052_v49  ;;  %v2075_v32 = vsub.f32 %v1967_v63, %v1996_v17  ;;  %v428_v24 = vand.u32 4294901760, %v427_v26  ;;  %1271 = vmatprep.subr.mxu0 %v1696_v30 }
  0x3f   : > { %2434 = vst [vmem:[#allocation25_spill] sm:$0xff] %v2065_v42  ;;  %2435 = vst [vmem:[#allocation26_spill] sm:$0xff] %v2069_v31  ;;  %1257 = vmatpush3.msra.mxu1 %v421_v38  ;;  %v546_v48 = vsub.f32 %v2043_v34, %v2389_v45  ;;  %341 = vmatmul.mubr.f32.vlgmr.msra.gmra.mxu0 %v340_v33  ;;  %v2391_v3 = vand.u32 4294901760, %v2065_v42  ;;  %v2395_v5 = vand.u32 4294901760, %v2069_v31 }
  0x40   : > { %2436 = vst [vmem:[#allocation27_spill] sm:$0xff] %v2075_v32  ;;  %1258 = vmatprep.subr.mxu1 %v540_v40  ;;  %v434_v38 = vsub.f32 %v2052_v49, %v2387_v18  ;;  %1272 = vmatpush3.msra.mxu0 %v1712_v35  ;;  %v553_v63 = vsub.f32 %v2056_v12, %v2388_v50  ;;  %v2394_v19 = vand.u32 4294901760, %v2075_v32 }
  0x41   : > { %v2093_v33 = vsub.f32 %v1979_v10, %v2011_v36  ;;  %1259 = vmatpush3.msra.mxu1 %v428_v24  ;;  %v547_v26 = vand.u32 4294901760, %v546_v48  ;;  %1273 = vmatprep.subr.mxu0 %v1718_v37  ;;  %v441_v40 = vsub.f32 %v2065_v42, %v2391_v3  ;;  %v560_v18 = vsub.f32 %v2069_v31, %v2395_v5  ;;  %v2452_v5 = vld [vmem:[#allocation20_spill] sm:$0xff] }
  0x42   : > { %v2104_v50 = vsub.f32 %v2003_v59, %v2027_v29  ;;  %v435_v45 = vand.u32 4294901760, %v434_v38  ;;  %v554_v55 = vand.u32 4294901760, %v553_v63  ;;  %1274 = vmatpush3.msra.mxu0 %v1735_v43  ;;  %v448_v24 = vsub.f32 %v2075_v32, %v2394_v19  ;;  %708 = vmatprep.mubr.f32.mxu0 %v1641_v6  ;;  %v2451_v19 = vld [vmem:[#allocation19_spill] sm:$0xff] }
  0x43   : > { %2437 = vst [vmem:[#allocation28_spill] sm:$0xff] %v2093_v33  ;;  %v2393_v10 = vand.u32 4294901760, %v2093_v33  ;;  %1260 = vmatprep.subr.mxu1 %v547_v26  ;;  %v442_v48 = vand.u32 4294901760, %v441_v40  ;;  %v561_v3 = vand.u32 4294901760, %v560_v18  ;;  %1275 = vmatprep.subr.mxu0 %v1744_v47  ;;  %v2441_v40 = vld [vmem:[#allocation23_spill] sm:$0xff] }
  0x44   : > { %2438 = vst [vmem:[#allocation29_spill] sm:$0xff] %v2104_v50  ;;  %v2392_v59 = vand.u32 4294901760, %v2104_v50  ;;  %1261 = vmatpush3.msra.mxu1 %v435_v45  ;;  %v449_v38 = vand.u32 4294901760, %v448_v24  ;;  %1276 = vmatpush3.msra.mxu0 %v1758_v52  ;;  %v2442_v24 = vld [vmem:[#allocation10_spill] sm:$0xff] }
  0x45   : > { %v567_v63 = vsub.f32 %v2093_v33, %v2393_v10  ;;  %1262 = vmatprep.subr.mxu1 %v554_v55  ;;  %1277 = vmatprep.subr.mxu0 %v1772_v57  ;;  %v2439_v55 = vld [vmem:[#allocation8_spill] sm:$0xff]  ;;  %v2450_v10 = vld [vmem:[#allocation18_spill] sm:$0xff] }
  0x46   : > { %v455_v26 = vsub.f32 %v2104_v50, %v2392_v59  ;;  %1263 = vmatpush3.msra.mxu1 %v442_v48  ;;  %1278 = vmatpush3.msra.mxu0 %v1801_v16  ;;  %v2443_v48 = vld [vmem:[#allocation11_spill] sm:$0xff]  ;;  %v2449_v59 = vld [vmem:[#allocation17_spill] sm:$0xff] }
  0x47   : > { %v568_v18 = vand.u32 4294901760, %v567_v63  ;;  %1264 = vmatprep.subr.mxu1 %v561_v3  ;;  %1279 = vmatprep.subr.mxu0 %v1815_v54  ;;  %v2440_v3 = vld [vmem:[#allocation9_spill] sm:$0xff] }
  0x48   : > { %v456_v45 = vand.u32 4294901760, %v455_v26  ;;  %1265 = vmatpush3.msra.mxu1 %v449_v38  ;;  %1280 = vmatpush3.msra.mxu0 %v1827_v0  ;;  %v2444_v38 = vld [vmem:[#allocation12_spill] sm:$0xff]  ;;  %v2445_v63 = vld [vmem:[#allocation13_spill] sm:$0xff]  ;;  %v2446_v26 = vld [vmem:[#allocation14_spill] sm:$0xff] }
  0x49   : > { %1266 = vmatprep.subr.mxu1 %v568_v18  ;;  %1281 = vmatprep.subr.mxu0 %v1839_v1  ;;  %v2447_v18 = vld [vmem:[#allocation15_spill] sm:$0xff] }
  0x4a   : > { %1267 = vmatpush3.msra.mxu1 %v456_v45  ;;  %1282 = vmatpush3.msra.mxu0 %v1851_v11  ;;  %v2448_v45 = vld [vmem:[#allocation16_spill] sm:$0xff] }
  0x4b   : > { %573 = vmatmul.mubr.f32.vlgmr.msra.gmra.mxu1 %v1637_v4  ;;  %1306 = vmatprep.subr.mxu1 %v1657_v13  ;;  %v2453_v4 = vld [vmem:[#allocation21_spill] sm:$0xff] }
  0x4c   : > { %1307 = vmatpush3.msra.mxu1 %v1659_v14  ;;  %1283 = vmatprep.subr.mxu0 %v1866_v61 }
  0x4d   : > { %1308 = vmatprep.subr.mxu1 %v1661_v15  ;;  %1284 = vmatpush3.msra.mxu0 %v1878_v51 }
  0x4e   : > { %1309 = vmatpush3.msra.mxu1 %v1671_v20  ;;  %1285 = vmatprep.subr.mxu0 %v1901_v60 }
  0x4f   : > { %1310 = vmatprep.subr.mxu1 %v1673_v21  ;;  %1286 = vmatpush3.msra.mxu0 %v1915_v8 }
  0x50   : > { %1311 = vmatpush3.msra.mxu1 %v1675_v22  ;;  %1287 = vmatprep.subr.mxu0 %v1935_v23 }
  0x51   : > { %1312 = vmatprep.subr.mxu1 %v1688_v27  ;;  %1288 = vmatpush3.msra.mxu0 %v1949_v39 }
  0x52   : > { %1313 = vmatpush3.msra.mxu1 %v1690_v28  ;;  %1289 = vmatprep.subr.mxu0 %v1961_v56 }
  0x53   : > { %1314 = vmatprep.subr.mxu1 %v2439_v55  ;;  %1290 = vmatpush3.msra.mxu0 %v1973_v46 }
  0x54   : > { %1315 = vmatpush3.msra.mxu1 %v2440_v3  ;;  %1291 = vmatprep.subr.mxu0 %v2441_v40 }
  0x55   : > { %1316 = vmatprep.subr.mxu1 %v2442_v24  ;;  %1292 = vmatpush3.msra.mxu0 %v2000_v62 }
  0x56   : > { %1317 = vmatpush3.msra.mxu1 %v2443_v48  ;;  %1293 = vmatprep.subr.mxu0 %v2020_v2 }
  0x57   : > { %1318 = vmatprep.subr.mxu1 %v2444_v38  ;;  %1294 = vmatpush3.msra.mxu0 %v2031_v25 }
  0x58   : > { %1319 = vmatpush3.msra.mxu1 %v2445_v63  ;;  %1295 = vmatprep.subr.mxu0 %v2043_v34 }
  0x59   : > { %1320 = vmatprep.subr.mxu1 %v2446_v26  ;;  %1296 = vmatpush3.msra.mxu0 %v2052_v49 }
  0x5a   : > { %1321 = vmatpush3.msra.mxu1 %v2447_v18  ;;  %1297 = vmatprep.subr.mxu0 %v2056_v12  ;;  %v2454_v12 = vld [vmem:[#allocation7_spill] sm:$0xff] }
  0x5b   : > { %1322 = vmatprep.subr.mxu1 %v2448_v45  ;;  %1298 = vmatpush3.msra.mxu0 %v2065_v42  ;;  %v2455_v42 = vld [vmem:[#allocation22_spill] sm:$0xff] }
  0x5c   : > { %1323 = vmatpush3.msra.mxu1 %v2449_v59  ;;  %1299 = vmatprep.subr.mxu0 %v2069_v31  ;;  %v2456_v31 = vand.u32 4294901760, %v1696_v30  ;;  %v2460_v30 = vand.u32 4294901760, %v1744_v47  ;;  %v2464_v47 = vand.u32 4294901760, %v1801_v16  ;;  %v2469_v16 = vand.u32 4294901760, %v1851_v11 }
  0x5d   : > { %1324 = vmatprep.subr.mxu1 %v2450_v10  ;;  %1300 = vmatpush3.msra.mxu0 %v2075_v32  ;;  %v2457_v32 = vand.u32 4294901760, %v1712_v35  ;;  %v2461_v35 = vand.u32 4294901760, %v1758_v52  ;;  %v2465_v52 = vand.u32 4294901760, %v1815_v54  ;;  %v2470_v54 = vand.u32 4294901760, %v1866_v61 }
  0x5e   : > { %1325 = vmatpush3.msra.mxu1 %v2451_v19  ;;  %1301 = vmatprep.subr.mxu0 %v2093_v33  ;;  %v2458_v33 = vand.u32 4294901760, %v1718_v37  ;;  %v2462_v37 = vand.u32 4294901760, %v1772_v57  ;;  %v2467_v57 = vand.u32 4294901760, %v1827_v0  ;;  %v2481_v61 = vand.u32 4294901760, %v2031_v25  ;;  %v2492_v25 = vld [vmem:[#allocation28_spill] sm:$0xff] }
  0x5f   : > { %1326 = vmatprep.subr.mxu1 %v2452_v5  ;;  %1302 = vmatpush3.msra.mxu0 %v2104_v50  ;;  %v2459_v50 = vand.u32 4294901760, %v1735_v43  ;;  %v2463_v43 = vand.u32 4294901760, %v1641_v6  ;;  %v2468_v6 = vand.u32 4294901760, %v1839_v1  ;;  %v2483_v0 = vand.u32 4294901760, %v2052_v49  ;;  %v2484_v1 = vld [vmem:[#allocation24_spill] sm:$0xff]  ;;  %v2494_v49 = vld [vmem:[#allocation29_spill] sm:$0xff] }
  0x60   : > { %1327 = vmatpush3.msra.mxu1 %v2453_v4  ;;  %711 = vmatmul.mubr.f32.vlgmr.msra.gmra.mxu0 %v2454_v12  ;;  %v2485_v11 = vand.u32 4294901760, %v2484_v1 }
  0x61   : > { %1328 = vmatprep.subr.mxu1 %v2455_v42  ;;  %1341 = vmatprep.subr.mxu0 %v2456_v31  ;;  %v2466_v31 = vand.u32 4294901760, %v2454_v12  ;;  %v2495_v12 = vand.u32 4294901760, %v2494_v49 }
  0x62   : > { %1329 = vmatpush3.msra.mxu1 %v1911_v7  ;;  %1342 = vmatpush3.msra.mxu0 %v2457_v32  ;;  %v2497_v32 = vld [vmem:[#allocation6_spill] sm:$0xff] }
  0x63   : > { %1330 = vmatprep.subr.mxu1 %v1926_v53  ;;  %1343 = vmatprep.subr.mxu0 %v2458_v33 }
  0x64   : > { %1331 = vmatpush3.msra.mxu1 %v1938_v41  ;;  %1344 = vmatpush3.msra.mxu0 %v2459_v50  ;;  %v2496_v50 = vld [vmem:[#allocation5_spill] sm:$0xff] }
  0x65   : > { %1332 = vmatprep.subr.mxu1 %v1952_v58  ;;  %1345 = vmatprep.subr.mxu0 %v2460_v30 }
  0x66   : > { %1333 = vmatpush3.msra.mxu1 %v1964_v44  ;;  %1346 = vmatpush3.msra.mxu0 %v2461_v35 }
  0x67   : > { %1334 = vmatprep.subr.mxu1 %v1976_v9  ;;  %1347 = vmatprep.subr.mxu0 %v2462_v37 }
  0x68   : > { %1335 = vmatpush3.msra.mxu1 %v1996_v17  ;;  %815 = vmatprep.mubr.f32.mxu1 %v2463_v43 }
  0x69   : > { %1336 = vmatprep.subr.mxu1 %v2011_v36  ;;  %1348 = vmatpush3.msra.mxu0 %v2464_v47 }
  0x6a   : > { %1337 = vmatpush3.msra.mxu1 %v2027_v29  ;;  %1349 = vmatprep.subr.mxu0 %v2465_v52 }
  0x6b   : > { %819 = vmatmul.mubr.f32.vlgmr.msra.gmra.mxu1 %v2466_v31  ;;  %1376 = vmatprep.subr.mxu1 %v1657_v13  ;;  %v2471_v13 = vand.u32 4294901760, %v1878_v51  ;;  %v2480_v51 = vand.u32 4294901760, %v2020_v2 }
  0x6c   : > { %1350 = vmatpush3.msra.mxu0 %v2467_v57  ;;  %1377 = vmatpush3.msra.mxu1 %v1659_v14  ;;  %v2472_v14 = vand.u32 4294901760, %v1901_v60  ;;  %v2482_v60 = vand.u32 4294901760, %v2043_v34  ;;  %v2493_v34 = vand.u32 4294901760, %v2492_v25 }
  0x6d   : > { %1351 = vmatprep.subr.mxu0 %v2468_v6  ;;  %1378 = vmatprep.subr.mxu1 %v1661_v15  ;;  %v2473_v15 = vand.u32 4294901760, %v1915_v8  ;;  %v2477_v8 = vand.u32 4294901760, %v1973_v46 }
  0x6e   : > { %1352 = vmatpush3.msra.mxu0 %v2469_v16  ;;  %1379 = vmatpush3.msra.mxu1 %v1671_v20  ;;  %v2474_v20 = vand.u32 4294901760, %v1935_v23 }
  0x6f   : > { %1353 = vmatprep.subr.mxu0 %v2470_v54  ;;  %1380 = vmatprep.subr.mxu1 %v1673_v21  ;;  %v2475_v21 = vand.u32 4294901760, %v1949_v39  ;;  %v2486_v39 = vld [vmem:[#allocation25_spill] sm:$0xff] }
  0x70   : > { %1354 = vmatpush3.msra.mxu0 %v2471_v13  ;;  %1381 = vmatpush3.msra.mxu1 %v1675_v22  ;;  %v2476_v22 = vand.u32 4294901760, %v1961_v56  ;;  %v2487_v23 = vand.u32 4294901760, %v2486_v39  ;;  %v2488_v56 = vld [vmem:[#allocation26_spill] sm:$0xff] }
  0x71   : > { %1355 = vmatprep.subr.mxu0 %v2472_v14  ;;  %1382 = vmatprep.subr.mxu1 %v1688_v27  ;;  %v2478_v27 = vand.u32 4294901760, %v2441_v40  ;;  %v2489_v46 = vand.u32 4294901760, %v2488_v56 }
  0x72   : > { %1356 = vmatpush3.msra.mxu0 %v2473_v15  ;;  %1383 = vmatpush3.msra.mxu1 %v1690_v28  ;;  %v2479_v28 = vand.u32 4294901760, %v2000_v62  ;;  %v2490_v62 = vld [vmem:[#allocation27_spill] sm:$0xff] }
  0x73   : > { %1357 = vmatprep.subr.mxu0 %v2474_v20  ;;  %1384 = vmatprep.subr.mxu1 %v2439_v55  ;;  %v2491_v2 = vand.u32 4294901760, %v2490_v62 }
  0x74   : > { %1358 = vmatpush3.msra.mxu0 %v2475_v21  ;;  %1385 = vmatpush3.msra.mxu1 %v2440_v3 }
  0x75   : > { %1359 = vmatprep.subr.mxu0 %v2476_v22  ;;  %1386 = vmatprep.subr.mxu1 %v2442_v24 }
  0x76   : > { %1360 = vmatpush3.msra.mxu0 %v2477_v8  ;;  %1387 = vmatpush3.msra.mxu1 %v2443_v48 }
  0x77   : > { %1361 = vmatprep.subr.mxu0 %v2478_v27  ;;  %1388 = vmatprep.subr.mxu1 %v2444_v38 }
  0x78   : > { %1362 = vmatpush3.msra.mxu0 %v2479_v28  ;;  %1389 = vmatpush3.msra.mxu1 %v2445_v63 }
  0x79   : > { %1363 = vmatprep.subr.mxu0 %v2480_v51  ;;  %1390 = vmatprep.subr.mxu1 %v2446_v26 }
  0x7a   : > { %1364 = vmatpush3.msra.mxu0 %v2481_v61  ;;  %1391 = vmatpush3.msra.mxu1 %v2447_v18 }
  0x7b   : > { %1365 = vmatprep.subr.mxu0 %v2482_v60  ;;  %1392 = vmatprep.subr.mxu1 %v2448_v45 }
  0x7c   : > { %1366 = vmatpush3.msra.mxu0 %v2483_v0  ;;  %1393 = vmatpush3.msra.mxu1 %v2449_v59 }
  0x7d   : > { %1367 = vmatprep.subr.mxu0 %v2485_v11  ;;  %1394 = vmatprep.subr.mxu1 %v2450_v10 }
  0x7e   : > { %1368 = vmatpush3.msra.mxu0 %v2487_v23  ;;  %1395 = vmatpush3.msra.mxu1 %v2451_v19 }
  0x7f   : > { %1369 = vmatprep.subr.mxu0 %v2489_v46  ;;  %1396 = vmatprep.subr.mxu1 %v2452_v5 }
  0x80   : > { %1370 = vmatpush3.msra.mxu0 %v2491_v2  ;;  %1397 = vmatpush3.msra.mxu1 %v2453_v4 }
  0x81   : > { %1371 = vmatprep.subr.mxu0 %v2493_v34  ;;  %1398 = vmatprep.subr.mxu1 %v2455_v42 }
  0x82   : > { %1372 = vmatpush3.msra.mxu0 %v2495_v12  ;;  %985 = vmatprep.mubr.f32.mxu0 %v2496_v50 }
  0x83   : > { %1399 = vmatpush3.msra.mxu1 %v1911_v7  ;;  %987 = vmatmul.mubr.f32.vlgmr.msra.gmra.mxu0 %v2497_v32 }
  0x84   : > { %1400 = vmatprep.subr.mxu1 %v1926_v53  ;;  %1089 = vmatprep.mubr.f32.mxu1 %v2496_v50 }
  0x85   : > { %1401 = vmatpush3.msra.mxu1 %v1938_v41 }
  0x86   : > { %1402 = vmatprep.subr.mxu1 %v1952_v58 }
  0x87   : > { %1403 = vmatpush3.msra.mxu1 %v1964_v44 }
  0x88   : > { %1404 = vmatprep.subr.mxu1 %v1976_v9 }
  0x89   : > { %1405 = vmatpush3.msra.mxu1 %v1996_v17 }
  0x8a   : > { %1406 = vmatprep.subr.mxu1 %v2011_v36 }
  0x8b   : > { %1407 = vmatpush3.msra.mxu1 %v2027_v29 }
  0x8c   : > { %1091 = vmatmul.mubr.f32.vlgmr.msra.gmra.mxu1 %v2497_v32 }
  0x91   : > { %v232_v19 = vpop.permute.xlu0 %231 }
  0xff   : > { %v1233_v4 = vpop.f32.mrf.mxu0 }
 0x101   : > { %v1234_v7 = vpop.f32.mrf.mxu0 }
 0x102   : > { %v1235_v41 = vadd.f32 %v1234_v7, %v1233_v4 }
 0x104   : > { %v343_v10 = vadd.f32 %v1235_v41, %v232_v19 }
 0x10b   : > { %v1268_v53 = vpop.f32.mrf.mxu1 }
 0x10d   : > { %v1269_v5 = vpop.f32.mrf.mxu1 }
 0x10e   : > { %v1270_v9 = vadd.f32 %v1269_v5, %v1268_v53 }
 0x110   : > { %v575_v29 = vadd.f32 %v1270_v9, %v343_v10 }
 0x120   : > { %v1303_v42 = vpop.f32.mrf.mxu0 }
 0x122   : > { %v1304_v58 = vpop.f32.mrf.mxu0 }
 0x123   : > { %v1305_v36 = vadd.f32 %v1304_v58, %v1303_v42 }
 0x125   : > { %v713_v3 = vadd.f32 %v1305_v36, %v575_v29 }
 0x12b   : > { %v1338_v33 = vpop.f32.mrf.mxu1 }
 0x12d   : > { %v1339_v17 = vpop.f32.mrf.mxu1 }
 0x12e   : > { %v1340_v55 = vadd.f32 %v1339_v17, %v1338_v33 }
 0x130   : > { %v821_v48 = vadd.f32 %v1340_v55, %v713_v3 }
 0x143   : > { %v1373_v44 = vpop.f32.mrf.mxu0 }
 0x145   : > { %v1374_v59 = vpop.f32.mrf.mxu0 }
 0x146   : > { %v1375_v40 = vadd.f32 %v1374_v59, %v1373_v44 }
 0x148   : > { %v989_v63 = vadd.f32 %v1375_v40, %v821_v48 }
 0x14c   : > { %v1408_v24 = vpop.f32.mrf.mxu1 }
 0x14e   : > { %v1409_v38 = vpop.f32.mrf.mxu1 }
 0x14f   : > { %v1410_v26 = vadd.f32 %v1409_v38, %v1408_v24 }
 0x151   : > { %v1093_v18 = vadd.f32 %v1410_v26, %v989_v63 }
 0x153   : > { %1468 = vtanh.f32 %v1093_v18 }
 0x160   : > { %v1469_v45 = vpop.eup %1468 }
 0x161   : > { %1098 = vst.msk [vmem:[%s185_s19] sm:$0xff] %vm1097_vm0, %v1469_v45 }
 0x162   : > { %1483 = shalt.err (!%p1480_p5)
}
 0x163   : > { %s1484_s5 = scalar_lea.hbm %s2290_s27, 128  ;;  %s1488_s8 = scalar_lea.hbm %s2333_s3, 256 }
 0x164   : > { %p1485_p6 = scmp.ne.s32.totalorder %s2290_s27, %s1484_s5  ;;  %p1489_p10 = scmp.lt.s32.totalorder %s2290_s27, %s2333_s3 }
 0x165   : > { %p1490_p11 = scmp.lt.s32.totalorder %s1488_s8, %s1484_s5 }
 0x166   : > { %p1486_p7 = pnand %p1485_p6, %p1610_p4 }
 0x167   : > { %p1491_p12 = por %p1490_p11, %p1489_p10 }
 0x168   : > { %p1487_p9 = pneg %p1486_p7 }
 0x16a   : > { %p1492_p13 = pnand %p1491_p12, %p1487_p9 }
 0x16c   : > { %1495 = shalt.err (!%p1492_p13)
}
 0x16d   : > { %1411 = dma.vmem_to_hbm [thread:$0]  (%p1610_p4), %s1115_s21, 128, %s2290_s27, %s1100_s28  }
 0x16e PF: > { %p1417_p0 = scmp.ge.s32.totalorder %s1546_s17, 2  ;;  %s1126_s11 = sand.u32 1, %s1526_s12  }
 0x16f   : > { %s1127_s18 = scalar_lea.sflag [#allocation3], %s1126_s11 }
 0x170   : > { %p1414_p1 = pnand %p1417_p0, %p1617_p8 }
 0x172   : > { %p1415_p2 = pneg %p1414_p1 }
 0x174   : > { %1521 = dma.done.wait (%p1415_p2), %s1127_s18, 128  }
 0x175   : > { %1523 = vsyncadd (%p1415_p2), %s1127_s18, 4294967168  ;;  %s16_s17 = sadd.s32 1, %s1546_s17   ;;  %s2498_s12 = smov %s1530_s13 }
 0x176   : > { %p13_p3 = scmp.ge.s32.totalorder %s16_s17, 4   ;;  %s2499_s13 = smov %s1534_s14 }
 0x177   : > { %s2500_s14 = smov %s1623_s25  ;;  %s2501_s15 = smov %s1542_s16 }
 0x178   : > { %s2502_s16 = smov %s2504_s20  ;;  %15 = sbr.rel (!%p13_p3) target bundleno = 4 (0x4), region = 67 }
 0x17d   :  { %1132 = vsyncpa [#allocation3], 1 }
 0x17e   :  { %1134 = vsyncpa [#allocation3 + $0x1], 1 }

</bundles_post_ra>
